<compile_context>
chip_gen: v7x
topology: tpu7x:2x2x1
jax: 0.10.0
libtpu: 0.0.40
codegen_flags: <defaults>
</compile_context>

<pallas_src>
import functools

import jax
import jax.numpy as jnp
from jax.experimental import pallas as pl
from jax.experimental.pallas import tpu as pltpu


def _round_down(v, m):
    return max(m, (v // m) * m)


@functools.lru_cache(maxsize=None)
def _vmem_budget():
    """(scoped vmem_limit_bytes, block-buffer budget) sized per TPU generation."""
    cap = None
    try:
        cap = getattr(pltpu.get_tpu_info(), "vmem_capacity_bytes", None)
    except Exception:
        cap = None
    if not cap:
        cap = 64 * 1024 * 1024                      # conservative (v7x-sized) fallback
    limit = min((int(cap) * 3) // 4, 100 * 1024 * 1024)   # ~96 MiB v5e/v6e, ~48 MiB v7x
    budget = (limit * 3) // 4                              # headroom for compiler temps
    return int(limit), int(budget)


def _feat_tile_candidates(D, feat_tile):
    """Lane-dense feature tile candidates, widest first."""
    if D % 128 != 0 or D <= 128:
        return [D]                                   # full-extent block (always legal)
    max_tn = min(feat_tile, D)
    if D >= 256:
        # Keep >= 2 feature tiles so both v7x TensorCores get work on the
        # 'parallel' feature axis; negligible cost on single-TC chips.
        max_tn = min(max_tn, _round_down(D // 2, 128))
    tn = _round_down(max_tn, 128)
    cands = []
    while tn >= 128:
        cands.append(tn)
        if tn == 128:
            break
        tn = max(128, _round_down(tn // 2, 128))
    return cands


# --------------------------------------------------------------------------
# Fused single-pass kernel: whole batch resident per feature tile.
# --------------------------------------------------------------------------
def _phm_bn_fused_kernel(x_ref, g_ref, b_ref, o_ref, *, eps, batch):
    inv_n = 1.0 / batch
    pilot = x_ref[0:1, :].astype(jnp.float32)                 # (1, tn)
    d = x_ref[...].astype(jnp.float32) - pilot                 # short-lived f32 tile
    dmean = jnp.sum(d, axis=0, keepdims=True) * inv_n
    var = jnp.maximum(jnp.sum(d * d, axis=0, keepdims=True) * inv_n - dmean * dmean, 0.0)
    mean = pilot + dmean
    scale = jax.lax.rsqrt(var + eps) * g_ref[...]              # (1, tn)
    shift = b_ref[...] - mean * scale
    # Re-cast x from the (possibly narrow-dtype) VMEM block here instead of
    # holding the earlier f32 cast live across the whole body: keeps the
    # full-tile f32 footprint down for bf16/int8 inputs (extra cast is free
    # VPU filler under the HBM-bound roofline).
    o_ref[...] = (x_ref[...].astype(jnp.float32) * scale + shift).astype(o_ref.dtype)


# --------------------------------------------------------------------------
# Two-pass path for large B: (1) batch-tiled pilot-shifted stats -> per-column
# scale/shift, (2) streaming normalize y = x*scale + shift.
# --------------------------------------------------------------------------
def _phm_bn_stats_kernel(x_ref, g_ref, b_ref, scale_ref, shift_ref, pilot_ref, *,
                         eps, batch, batch_tile, needs_mask):
    bstep = pl.program_id(1)
    last = pl.num_programs(1) - 1

    # scale_ref accumulates sum(x - pilot); shift_ref accumulates sum((x-pilot)^2)
    # until the finalize step rewrites them with the folded scale/shift.
    @pl.when(bstep == 0)
    def _():
        pilot_ref[...] = x_ref[0:1, :].astype(jnp.float32)
        scale_ref[...] = jnp.zeros_like(scale_ref)
        shift_ref[...] = jnp.zeros_like(shift_ref)

    d = x_ref[...].astype(jnp.float32) - pilot_ref[...]

    def _accumulate(dd):
        scale_ref[...] += jnp.sum(dd, axis=0, keepdims=True)
        shift_ref[...] += jnp.sum(dd * dd, axis=0, keepdims=True)

    if needs_mask:
        # Mask padded rows only on the final (partial) batch block; every other
        # block skips the iota/compare/select entirely.
        @pl.when(bstep != last)
        def _():
            _accumulate(d)

        @pl.when(bstep == last)
        def _():
            row = jax.lax.broadcasted_iota(jnp.int32, d.shape, 0) + bstep * batch_tile
            _accumulate(jnp.where(row < batch, d, 0.0))
    else:
        _accumulate(d)

    @pl.when(bstep == last)
    def _():
        inv_n = 1.0 / batch
        dmean = scale_ref[...] * inv_n
        var = jnp.maximum(shift_ref[...] * inv_n - dmean * dmean, 0.0)   # biased var
        mean = pilot_ref[...] + dmean
        scale = jax.lax.rsqrt(var + eps) * g_ref[...]
        scale_ref[...] = scale
        shift_ref[...] = b_ref[...] - mean * scale


def _phm_bn_apply_kernel(x_ref, scale_ref, shift_ref, o_ref):
    x = x_ref[...].astype(jnp.float32)
    o_ref[...] = (x * scale_ref[...] + shift_ref[...]).astype(o_ref.dtype)


# --------------------------------------------------------------------------
# Wrapper
# --------------------------------------------------------------------------
def naive_phm_norm(x, gamma, beta, *, eps=1e-5, feat_tile=1024, max_batch_tile=None):
    """x: (B, D) with D = phm_dim * num_features. gamma/beta: (D,)."""
    B, D = x.shape
    itemsize = jnp.dtype(x.dtype).itemsize
    sub = max(8, 32 // itemsize)             # sublane pack: 8 f32 / 16 bf16 / 32 int8
    vmem_limit, budget = _vmem_budget()

    def tb_cap_for(tn):
        # 2 in-bufs + 2 out-bufs of the (tb, tn) x block (double-buffered) plus
        # ~2 live f32 full-tile temporaries inside the body.
        per_row = tn * (4 * itemsize + 2 * 4)
        cap = max(sub, ((budget // per_row) // sub) * sub)
        if max_batch_tile is not None:
            cap = max(sub, (min(cap, max_batch_tile) // sub) * sub)
        return cap

    candidates = _feat_tile_candidates(D, feat_tile)
    gamma_row = gamma.reshape(1, D).astype(jnp.float32)
    beta_row = beta.reshape(1, D).astype(jnp.float32)

    # Prefer the fused single pass (2x HBM traffic vs 3x for two-pass): shrink
    # the feature tile before falling back to the two-pass formulation.
    for tn in candidates:
        if B <= tb_cap_for(tn):
            n_feat = pl.cdiv(D, tn)
            kernel = functools.partial(_phm_bn_fused_kernel, eps=eps, batch=B)
            return pl.pallas_call(
                kernel,
                out_shape=jax.ShapeDtypeStruct((B, D), x.dtype),
                grid_spec=pltpu.PrefetchScalarGridSpec(
                    num_scalar_prefetch=0,
                    grid=(n_feat,),
                    in_specs=[
                        pl.BlockSpec((B, tn), lambda j: (0, j)),
                        pl.BlockSpec((1, tn), lambda j: (0, j)),
                        pl.BlockSpec((1, tn), lambda j: (0, j)),
                    ],
                    out_specs=pl.BlockSpec((B, tn), lambda j: (0, j)),
                ),
                compiler_params=pltpu.CompilerParams(
                    dimension_semantics=("parallel",),
                    vmem_limit_bytes=vmem_limit,
                ),
            )(x, gamma_row, beta_row)

    # ---------------- two-pass path for large B ----------------
    tn = candidates[0]                       # widest lane-dense tile
    tb = tb_cap_for(tn)
    n_feat = pl.cdiv(D, tn)
    n_batch = pl.cdiv(B, tb)
    needs_mask = (B % tb) != 0

    stats_kernel = functools.partial(
        _phm_bn_stats_kernel, eps=eps, batch=B, batch_tile=tb, needs_mask=needs_mask)

    scale, shift = pl.pallas_call(
        stats_kernel,
        out_shape=(jax.ShapeDtypeStruct((1, D), jnp.float32),
                   jax.ShapeDtypeStruct((1, D), jnp.float32)),
        grid_spec=pltpu.PrefetchScalarGridSpec(
            num_scalar_prefetch=0,
            grid=(n_feat, n_batch),                         # batch (reduction) axis last
            in_specs=[
                pl.BlockSpec((tb, tn), lambda j, b: (b, j)),
                pl.BlockSpec((1, tn), lambda j, b: (0, j)),
                pl.BlockSpec((1, tn), lambda j, b: (0, j)),
            ],
            out_specs=(pl.BlockSpec((1, tn), lambda j, b: (0, j)),
                       pl.BlockSpec((1, tn), lambda j, b: (0, j))),
            scratch_shapes=[pltpu.VMEM((1, tn), jnp.float32)],   # pilot row
        ),
        compiler_params=pltpu.CompilerParams(
            dimension_semantics=("parallel", "arbitrary"),
            vmem_limit_bytes=vmem_limit,
        ),
    )(x, gamma_row, beta_row)

    # Streaming normalize; one FMA pass per block (DMA-bound).  If the trace
    # shows exposed DMA at block boundaries, pipeline_mode=pl.Buffered(3) on the
    # x in_spec is the next knob to sweep.
    return pl.pallas_call(
        _phm_bn_apply_kernel,
        out_shape=jax.ShapeDtypeStruct((B, D), x.dtype),
        grid_spec=pltpu.PrefetchScalarGridSpec(
            num_scalar_prefetch=0,
            grid=(n_feat, n_batch),
            in_specs=[
                pl.BlockSpec((tb, tn), lambda j, b: (b, j)),
                pl.BlockSpec((1, tn), lambda j, b: (0, j)),
                pl.BlockSpec((1, tn), lambda j, b: (0, j)),
            ],
            out_specs=pl.BlockSpec((tb, tn), lambda j, b: (b, j)),
        ),
        compiler_params=pltpu.CompilerParams(
            dimension_semantics=("parallel", "parallel"),
            vmem_limit_bytes=vmem_limit,
        ),
    )(x, scale, shift)


def naive_phm_norm_ref(x, gamma, beta, *, eps=1e-5):
    """Pure-JAX reference matching PyTorch NaivePHMNorm forward (training mode)."""
    xf = x.astype(jnp.float32)
    mean = jnp.mean(xf, axis=0, keepdims=True)
    var = jnp.mean((xf - mean) ** 2, axis=0, keepdims=True)
    y = (xf - mean) / jnp.sqrt(var + eps) * gamma[None, :] + beta[None, :]
    return y.astype(x.dtype)


if __name__ == "__main__":
    eps = 1e-5

    # --- Test 1: module config num_features=32, phm_dim=4 -> D=128, fused path.
    batch, phm_dim, num_features = 8, 4, 32
    D = phm_dim * num_features
    key = jax.random.PRNGKey(0)
    x = jax.random.normal(key, (batch, D), dtype=jnp.float32)
    gamma = jnp.ones((D,), dtype=jnp.float32)    # BatchNorm1d.reset_parameters(): weight=1
    beta = jnp.zeros((D,), dtype=jnp.float32)    #                                  bias=0
    out = jax.block_until_ready(naive_phm_norm(x, gamma, beta, eps=eps))
    ref = naive_phm_norm_ref(x, gamma, beta, eps=eps)
    assert out.shape == (batch, D)
    assert jnp.allclose(out, ref, atol=1e-4, rtol=1e-4), "fused path mismatch vs reference"

    # --- Test 2: forced two-pass path (small batch tile, partial last block),
    #     learned affine, mean offset to exercise the shifted-variance numerics.
    k1, k2, k3 = jax.random.split(jax.random.PRNGKey(1), 3)
    x2 = 10.0 + jax.random.normal(k1, (20, D), dtype=jnp.float32)
    gamma2 = jax.random.normal(k2, (D,), dtype=jnp.float32)
    beta2 = jax.random.normal(k3, (D,), dtype=jnp.float32)
    out2 = jax.block_until_ready(
        naive_phm_norm(x2, gamma2, beta2, eps=eps, max_batch_tile=8))
    ref2 = naive_phm_norm_ref(x2, gamma2, beta2, eps=eps)
    assert jnp.allclose(out2, ref2, atol=1e-4, rtol=1e-4), "two-pass path mismatch vs reference"

    # --- Test 3: D=256 (phm_dim=4, num_features=64): >=2 feature tiles, fused path.
    k4, k5, k6 = jax.random.split(jax.random.PRNGKey(2), 3)
    D3 = 4 * 64
    x3 = 10.0 + jax.random.normal(k4, (16, D3), dtype=jnp.float32)
    gamma3 = jax.random.normal(k5, (D3,), dtype=jnp.float32)
    beta3 = jax.random.normal(k6, (D3,), dtype=jnp.float32)
    out3 = jax.block_until_ready(naive_phm_norm(x3, gamma3, beta3, eps=eps))
    ref3 = naive_phm_norm_ref(x3, gamma3, beta3, eps=eps)
    assert jnp.allclose(out3, ref3, atol=1e-4, rtol=1e-4), "multi-tile fused mismatch vs reference"

    # --- Test 4: bf16 input (2-byte HBM traffic, f32 stats), fused path.
    xb = jax.random.normal(jax.random.PRNGKey(3), (16, D3), dtype=jnp.bfloat16)
    gb = jnp.ones((D3,), dtype=jnp.float32)
    bb = jnp.zeros((D3,), dtype=jnp.float32)
    outb = jax.block_until_ready(naive_phm_norm(xb, gb, bb, eps=eps))
    refb = naive_phm_norm_ref(xb, gb, bb, eps=eps)
    assert outb.dtype == jnp.bfloat16
    assert jnp.allclose(outb.astype(jnp.float32), refb.astype(jnp.float32),
                        atol=3e-2, rtol=3e-2), "bf16 fused mismatch vs reference"

    print("KERNEL_OK")
</pallas_src>

<mosaic_0001>
module attributes {stable_mosaic.version = 11 : i64} {
  func.func @_phm_bn_fused_kernel(%arg0: i32, %arg1: memref<8x128xf32, #tpu.memory_space<vmem>>, %arg2: memref<1x128xf32, #tpu.memory_space<vmem>>, %arg3: memref<1x128xf32, #tpu.memory_space<vmem>>, %arg4: memref<8x128xf32, #tpu.memory_space<vmem>>) attributes {dimension_semantics = [#tpu.dimension_semantics<parallel>], iteration_bounds = array<i64: 1>, scalar_prefetch = 0 : i64, scratch_operands = 0 : i64, tpu.core_type = #tpu.core_type<tc>, window_params = [{transform_indices = @transform_0, window_bounds = array<i64: 8, 128>}, {transform_indices = @transform_1, window_bounds = array<i64: 1, 128>}, {transform_indices = @transform_2, window_bounds = array<i64: 1, 128>}, {transform_indices = @transform_3, window_bounds = array<i64: 8, 128>}]} {
    %c0 = arith.constant 0 : index
    %c0_0 = arith.constant 0 : index
    %0 = vector.load %arg1[%c0, %c0_0] : memref<8x128xf32, #tpu.memory_space<vmem>>, vector<1x128xf32>
    %c0_1 = arith.constant 0 : index
    %c0_2 = arith.constant 0 : index
    %1 = vector.load %arg1[%c0_1, %c0_2] : memref<8x128xf32, #tpu.memory_space<vmem>>, vector<8x128xf32>
    %2 = vector.broadcast %0 : vector<1x128xf32> to vector<8x128xf32>
    %3 = arith.subf %1, %2 : vector<8x128xf32>
    %cst = arith.constant dense<0.000000e+00> : vector<128xf32>
    %4 = vector.multi_reduction <add>, %3, %cst [0] : vector<8x128xf32> to vector<128xf32>
    %5 = vector.shape_cast %4 : vector<128xf32> to vector<1x128xf32>
    %cst_3 = arith.constant 1.250000e-01 : f32
    %6 = vector.broadcast %cst_3 : f32 to vector<1x128xf32>
    %7 = arith.mulf %5, %6 : vector<1x128xf32>
    %8 = arith.mulf %3, %3 : vector<8x128xf32>
    %cst_4 = arith.constant dense<0.000000e+00> : vector<128xf32>
    %9 = vector.multi_reduction <add>, %8, %cst_4 [0] : vector<8x128xf32> to vector<128xf32>
    %10 = vector.shape_cast %9 : vector<128xf32> to vector<1x128xf32>
    %cst_5 = arith.constant 1.250000e-01 : f32
    %11 = vector.broadcast %cst_5 : f32 to vector<1x128xf32>
    %12 = arith.mulf %10, %11 : vector<1x128xf32>
    %13 = arith.mulf %7, %7 : vector<1x128xf32>
    %14 = arith.subf %12, %13 : vector<1x128xf32>
    %cst_6 = arith.constant 0.000000e+00 : f32
    %15 = vector.broadcast %cst_6 : f32 to vector<1x128xf32>
    %16 = arith.maximumf %14, %15 : vector<1x128xf32>
    %17 = arith.addf %0, %7 : vector<1x128xf32>
    %cst_7 = arith.constant 9.99999974E-6 : f32
    %18 = vector.broadcast %cst_7 : f32 to vector<1x128xf32>
    %19 = arith.addf %16, %18 : vector<1x128xf32>
    %20 = math.rsqrt %19 : vector<1x128xf32>
    %c0_8 = arith.constant 0 : index
    %c0_9 = arith.constant 0 : index
    %21 = vector.load %arg2[%c0_8, %c0_9] : memref<1x128xf32, #tpu.memory_space<vmem>>, vector<1x128xf32>
    %22 = arith.mulf %20, %21 : vector<1x128xf32>
    %c0_10 = arith.constant 0 : index
    %c0_11 = arith.constant 0 : index
    %23 = vector.load %arg3[%c0_10, %c0_11] : memref<1x128xf32, #tpu.memory_space<vmem>>, vector<1x128xf32>
    %24 = arith.mulf %17, %22 : vector<1x128xf32>
    %25 = arith.subf %23, %24 : vector<1x128xf32>
    %c0_12 = arith.constant 0 : index
    %c0_13 = arith.constant 0 : index
    %26 = vector.load %arg1[%c0_12, %c0_13] : memref<8x128xf32, #tpu.memory_space<vmem>>, vector<8x128xf32>
    %27 = vector.broadcast %22 : vector<1x128xf32> to vector<8x128xf32>
    %28 = arith.mulf %26, %27 : vector<8x128xf32>
    %29 = vector.broadcast %25 : vector<1x128xf32> to vector<8x128xf32>
    %30 = arith.addf %28, %29 : vector<8x128xf32>
    %c0_14 = arith.constant 0 : index
    %c0_15 = arith.constant 0 : index
    %31 = vector.load %arg4[%c0_14, %c0_15] : memref<8x128xf32, #tpu.memory_space<vmem>>, vector<8x128xf32>
    tpu.vector_store %arg4[%c0_14, %c0_15], %30 {strides = array<i32>} : memref<8x128xf32, #tpu.memory_space<vmem>>, vector<8x128xf32>,
    return
  }
  func.func @transform_0(%arg0: i32) -> (i32, i32) {
    %c0_i32 = arith.constant 0 : i32
    %c0_i32_0 = arith.constant 0 : i32
    return %c0_i32, %arg0 : i32, i32
  }
  func.func @transform_1(%arg0: i32) -> (i32, i32) {
    %c0_i32 = arith.constant 0 : i32
    %c0_i32_0 = arith.constant 0 : i32
    return %c0_i32, %arg0 : i32, i32
  }
  func.func @transform_2(%arg0: i32) -> (i32, i32) {
    %c0_i32 = arith.constant 0 : i32
    %c0_i32_0 = arith.constant 0 : i32
    return %c0_i32, %arg0 : i32, i32
  }
  func.func @transform_3(%arg0: i32) -> (i32, i32) {
    %c0_i32 = arith.constant 0 : i32
    %c0_i32_0 = arith.constant 0 : i32
    return %c0_i32, %arg0 : i32, i32
  }
}

</mosaic_0001>

<bundles_post_ra>
// kernel: tpu_custom_call.1
= control target key start
LH: loop header
LB: loop body
LE: loop exit
PB: predicated region body
PF: predicated region fallthrough
CT: control target
= control target key end

     0   :  { %8 = vsyncpa [#allocation3], 0  ;;  %s192_s0 = inlined_call_operand.hbm [shape: f32[8,128], index: 0, kind: input, shape index: {}]   ;;  %s193_s1 = inlined_call_operand.vmem [shape: f32[1,128], index: 1, kind: input, shape index: {}]   ;;  %s194_s2 = inlined_call_operand.vmem [shape: f32[1,128], index: 2, kind: input, shape index: {}]   ;;  %s195_s3 = inlined_call_operand.hbm [shape: f32[8,128], index: 3, kind: output, shape index: {}]  }
   0x1   :  { %9 = vsyncpa [#allocation4], 0  ;;  %s140_s12 = smov [#allocation2]   ;;  %s92_s16 = scalar_lea.hbm %s192_s0, 128 }
   0x2   :  { %s16_s13 = sshll.u32 %s140_s12, 4  ;;  %p93_p0 = scmp.ne.s32.totalorder %s192_s0, %s92_s16  ;;  %s17_s13 = int_to_ptr.vmem [resolvable:$true] %s16_s13 }
   0x3   :  { %p96_p1 = scmp.lt.u32.totalorder %s92_s16, %s192_s0 }
   0x5   :  { %p98_p2 = pnand %p96_p1, %p93_p0 }
   0x7   :  { %101 = shalt.err (!%p98_p2)
}
   0x8   :  { %s102_s21 = scalar_lea.vmem %s17_s13, 128  ;;  %p107_p4 = scmp.lt.s32.totalorder %s17_s13, %s17_s13 }
   0x9   :  { %p103_p3 = scmp.ne.s32.totalorder %s17_s13, %s102_s21  ;;  %p108_p5 = scmp.lt.s32.totalorder %s102_s21, %s102_s21 }
   0xb   :  { %p109_p6 = por %p108_p5, %p107_p4 }
   0xd   :  { %p110_p7 = pnand %p109_p6, %p103_p3 }
   0xf   :  { %113 = shalt.err (!%p110_p7)
}
  0x10   :  { %19 = dma.hbm_to_vmem [thread:$0]  %s192_s0, 128, %s17_s13, [#allocation3]  }
  0x11   :  { %136 = dma.done.wait [#allocation3], 128  }
  0x12   :  { %137 = vsyncadd [#allocation3], 4294967168  ;;  %v29_v0 = vlaneseq  ;;  %v27_v3 = vld [vmem:[#allocation2] sm:$0x1]  ;;  %s141_s27 = smov [#allocation5]  }
  0x13   :  { %v28_v4 = vld [vmem:[#allocation2] sm:$0xff]  ;;  %s79_s28 = sshll.u32 %s141_s27, 4  ;;  %s80_s28 = int_to_ptr.vmem [resolvable:$true] %s79_s28 }
  0x14   :  { %v30_v1 = vshrl.u32 %v29_v0, 7  ;;  %v55_v26 = vld [vmem:[%s193_s1] sm:$0x1]  ;;  %s114_s29 = scalar_lea.vmem %s80_s28, 128  ;;  %p119_p9 = scmp.lt.s32.totalorder %s80_s28, %s80_s28 }
  0x15   :  { %v57_v30 = vld [vmem:[%s194_s2] sm:$0x1]  ;;  %p115_p8 = scmp.ne.s32.totalorder %s80_s28, %s114_s29  ;;  %p120_p10 = scmp.lt.s32.totalorder %s114_s29, %s114_s29 }
  0x16   :  { %v31_v2 = vsub.s32 0, %v30_v1 }
  0x17   :  { %p121_p11 = por %p120_p10, %p119_p9 }
  0x18   :  { %v32_v5 = vrot.slane %v27_v3, %v31_v2 }
  0x19   :  { %p122_p12 = pnand %p121_p11, %p115_p8 }
  0x1a   :  { %v33_v6 = vsub.f32 %v28_v4, %v32_v5 }
  0x1c   :  { %v34_v7 = vrot.slane %v33_v6, 4  ;;  %v41_v8 = vmul.f32 %v33_v6, %v33_v6 }
  0x1e   :  { %v35_v9 = vadd.f32 %v34_v7, %v33_v6  ;;  %v42_v10 = vrot.slane %v41_v8, 4 }
  0x20   :  { %v36_v11 = vrot.slane %v35_v9, 2  ;;  %v43_v12 = vadd.f32 %v42_v10, %v41_v8 }
  0x22   :  { %v37_v13 = vadd.f32 %v36_v11, %v35_v9  ;;  %v44_v14 = vrot.slane %v43_v12, 2 }
  0x24   :  { %v38_v15 = vrot.slane %v37_v13, 1  ;;  %v45_v16 = vadd.f32 %v44_v14, %v43_v12 }
  0x26   :  { %v39_v17 = vadd.f32 %v38_v15, %v37_v13  ;;  %v46_v18 = vrot.slane %v45_v16, 1 }
  0x28   :  { %v40_v19 = vmul.f32 0.125, %v39_v17  ;;  %v47_v20 = vadd.f32 %v46_v18, %v45_v16 }
  0x2a   :  { %v48_v21 = vmul.f32 0.125, %v47_v20  ;;  %v49_v22 = vmul.f32 %v40_v19, %v40_v19  ;;  %v52_v27 = vadd.f32 %v40_v19, %v27_v3 }
  0x2c   :  { %v50_v23 = vsub.f32 %v48_v21, %v49_v22 }
  0x2e   :  { %v51_v24 = vmax.f32 %v50_v23, 0.0 }
  0x30   :  { %v53_v25 = vadd.f32 1e-05, %v51_v24 }
  0x32   :  { %90 = vrsqrt.f32 %v53_v25 }
  0x3c   :  { %v91_v28 = vpop.eup %90 }
  0x3d   :  { %v56_v29 = vmul.f32 %v91_v28, %v55_v26 }
  0x3f   :  { %v58_v31 = vmul.f32 %v56_v29, %v52_v27  ;;  %v63_v32 = vrot.slane %v56_v29, %v31_v2 }
  0x41   :  { %v59_v33 = vsub.f32 %v57_v30, %v58_v31  ;;  %v64_v34 = vmul.f32 %v63_v32, %v28_v4 }
  0x43   :  { %v69_v35 = vrot.slane %v59_v33, %v31_v2 }
  0x45   :  { %v71_v36 = vadd.f32 %v69_v35, %v64_v34 }
  0x47   :  { %72 = vst [vmem:[#allocation5] sm:$0xff] %v71_v36 }
  0x48   :  { %125 = shalt.err (!%p122_p12)
}
  0x49   :  { %s126_s2 = scalar_lea.hbm %s195_s3, 128 }
  0x4a   :  { %p127_p13 = scmp.ne.s32.totalorder %s195_s3, %s126_s2  ;;  %p130_p0 = scmp.lt.u32.totalorder %s126_s2, %s195_s3 }
  0x4c   :  { %p132_p1 = pnand %p130_p0, %p127_p13 }
  0x4e   :  { %135 = shalt.err (!%p132_p1)
}
  0x4f   :  { %82 = dma.vmem_to_hbm [thread:$0]  %s80_s28, 128, %s195_s3, [#allocation4]  }
  0x50   :  { %138 = dma.done.wait [#allocation4], 128  }
  0x51   :  { %139 = vsyncadd [#allocation4], 4294967168 }
  0x52   :  { %86 = vsyncpa [#allocation3], 1 }
  0x53   :  { %87 = vsyncpa [#allocation4], 1 }

</bundles_post_ra>
